<compile_context>
chip_gen: v5e
topology: v5e:2x2
jax: 0.10.0
libtpu: 0.0.40
codegen_flags: <defaults>
</compile_context>

<pallas_src>
import jax
import jax.numpy as jnp
from jax.experimental import pallas as pl
from jax.experimental.pallas import tpu as pltpu


def _round_up(n, k):
    return ((n + k - 1) // k) * k


def _decoder_kernel(x_ref, w1_ref, w2_ref, o_ref):
    # x_ref : [bt, d1]    f32 batch tile (features unpadded)
    # w1_ref: [d1, m_p]   bf16 == M zero-padded along m        (grid-resident)
    # w2_ref: [m_p, d1_p] bf16 == H.T zero-padded              (grid-resident)
    # o_ref : [bt, d1_p]  f32 lane-dense output tile
    x = x_ref[...].astype(w1_ref.dtype)          # VPU cast, hidden under MXU
    # Layer 1: x @ M  (contraction on last axis, f32 accumulation on the MXU)
    h = jnp.dot(x, w1_ref[...], preferred_element_type=jnp.float32)
    h = jnp.maximum(h, 0.0)                      # ReLU in f32
    # Layer 2: relu(.) @ H.T  (weight pre-transposed once at prepare time)
    y = jnp.dot(h.astype(w2_ref.dtype), w2_ref[...],
                preferred_element_type=jnp.float32)
    o_ref[...] = y.astype(o_ref.dtype)


def prepare_decoder_weights(M, H, *, compute_dtype=jnp.bfloat16):
    """One-time weight preparation (call once, reuse across forward calls).

    M: [d1, m], H: [d1, m]  (as in the PyTorch module)
    Returns (w1, w2, d1) with
      w1 = M  zero-padded along m to a 128 multiple         -> [d1, m_p]
      w2 = H.T zero-padded along both dims to 128 multiples -> [m_p, d1_p]
    Zero padding is mathematically inert: padded hidden columns of h are zero
    and padded output columns of w2 are zero, so slicing back is exact.
    """
    d1, m = M.shape
    assert H.shape == (d1, m), (H.shape, (d1, m))
    m_p = _round_up(m, 128)
    d1_p = _round_up(d1, 128)
    w1 = jnp.zeros((d1, m_p), compute_dtype).at[:, :m].set(
        M.astype(compute_dtype))
    w2 = jnp.zeros((m_p, d1_p), compute_dtype).at[:m, :d1].set(
        H.T.astype(compute_dtype))
    return w1, w2, d1


def _forward(x, w1, w2, bt, single_buffer_weights):
    B, d1 = x.shape
    m_p = w1.shape[1]
    d1_p = w2.shape[1]
    grid = (pl.cdiv(B, bt),)

    # Grid-resident weights (constant block index). Single-buffer them when
    # possible: with an unchanging block there is nothing to double-buffer,
    # and it halves weight VMEM (matters under v7x's 64 MiB).
    wkw = {"pipeline_mode": pl.Buffered(1)} if single_buffer_weights else {}
    w1_spec = pl.BlockSpec((d1, m_p), lambda i: (0, 0), **wkw)
    w2_spec = pl.BlockSpec((m_p, d1_p), lambda i: (0, 0), **wkw)

    w_itemsize = w1.dtype.itemsize
    n_wbufs = 1 if single_buffer_weights else 2
    vmem_est = (2 * bt * d1 * 4                              # x double buffer
                + 2 * bt * d1_p * 4                          # out double buffer
                + n_wbufs * (d1 * m_p + m_p * d1_p) * w_itemsize
                + bt * m_p * (4 + w_itemsize)                # hidden f32 + bf16
                + bt * d1_p * 4)                             # f32 pre-store acc
    try:
        vmem_cap = int(pltpu.get_tpu_info().vmem_capacity_bytes)
    except Exception:
        vmem_cap = 64 << 20                                  # v7x per-core VMEM
    vmem_limit = int(min(max(2 * vmem_est, 32 << 20), vmem_cap - (8 << 20)))

    cost = pl.CostEstimate(
        flops=4 * B * d1 * m_p,
        transcendentals=0,
        bytes_accessed=int(x.size * x.dtype.itemsize
                           + (w1.size + w2.size) * w_itemsize
                           + B * d1_p * 4))

    return pl.pallas_call(
        _decoder_kernel,
        out_shape=jax.ShapeDtypeStruct((B, d1_p), jnp.float32),
        grid_spec=pltpu.PrefetchScalarGridSpec(
            num_scalar_prefetch=0,
            grid=grid,
            in_specs=[
                pl.BlockSpec((bt, d1), lambda i: (i, 0)),   # raw f32 x tile
                w1_spec,                                    # M (resident)
                w2_spec,                                    # H.T (resident)
            ],
            out_specs=pl.BlockSpec((bt, d1_p), lambda i: (i, 0)),
        ),
        compiler_params=pltpu.CompilerParams(
            dimension_semantics=("parallel",),
            vmem_limit_bytes=vmem_limit),
        cost_estimate=cost,
    )(x, w1, w2)


def small_dataset_image_decoder_apply(x, w1, w2, d1, *, batch_tile=512):
    """forward(x) = relu(x @ M) @ H.T with weights from prepare_decoder_weights.

    x: [B, d1] float32.  Returns [B, d1] float32.  jit-compatible.
    """
    B = x.shape[0]
    d1_p = w2.shape[1]

    # Batch tile: big enough to amortise the ~600-cycle per-step pipeline
    # overhead, multiple of 16 (bf16 sublane packing), never larger than B.
    bt = min(batch_tile, B)
    if bt < B:
        bt = max(16, (bt // 16) * 16)
    # Keep >= 2 grid steps on the parallel batch axis when the batch is
    # splittable so both v7x TensorCores get work (no-op on v5e/v6e).
    if B >= 32:
        bt = min(bt, max(16, _round_up(pl.cdiv(B, 2), 16)))

    try:
        out = _forward(x, w1, w2, bt, single_buffer_weights=True)
    except Exception:
        # pipeline_mode=pl.Buffered(1) unavailable/rejected -> default buffering.
        out = _forward(x, w1, w2, bt, single_buffer_weights=False)

    # Only pay the slice when the feature dim actually needed padding.
    return out if d1_p == d1 else out[:, :d1]


if __name__ == "__main__":
    key = jax.random.PRNGKey(0)
    k_x, k_M, k_H = jax.random.split(key, 3)

    B, d1, m = 16, 32, 64           # small shapes consistent with the module
    x = jax.random.normal(k_x, (B, d1), dtype=jnp.float32)
    M = jax.random.normal(k_M, (d1, m), dtype=jnp.float32)
    H = jax.random.normal(k_H, (d1, m), dtype=jnp.float32)

    # One-time weight preparation (hoisted out of the per-call path).
    w1, w2, d1_s = prepare_decoder_weights(M, H)
    w1, w2 = jax.block_until_ready((w1, w2))

    out = small_dataset_image_decoder_apply(x, w1, w2, d1_s)
    out = jax.block_until_ready(out)

    # Reference with the same bf16-rounded operands (kernel accumulates in f32
    # and re-rounds the hidden activation to bf16 before the second matmul).
    xb = x.astype(jnp.bfloat16).astype(jnp.float32)
    Mb = M.astype(jnp.bfloat16).astype(jnp.float32)
    Hb = H.astype(jnp.bfloat16).astype(jnp.float32)
    hb = jnp.maximum(xb @ Mb, 0.0).astype(jnp.bfloat16).astype(jnp.float32)
    ref = hb @ Hb.T

    assert out.shape == (B, d1), out.shape
    assert out.dtype == jnp.float32
    assert jnp.allclose(out, ref, atol=5e-2, rtol=5e-2), float(
        jnp.max(jnp.abs(out - ref)))

    print("KERNEL_OK")
</pallas_src>

<mosaic_0001>
module attributes {stable_mosaic.version = 11 : i64} {
  func.func @_decoder_kernel(%arg0: i32, %arg1: memref<16x32xf32, #tpu.memory_space<vmem>>, %arg2: memref<32x128xbf16, #tpu.memory_space<vmem>>, %arg3: memref<128x128xbf16, #tpu.memory_space<vmem>>, %arg4: memref<16x128xf32, #tpu.memory_space<vmem>>) attributes {dimension_semantics = [#tpu.dimension_semantics<parallel>], iteration_bounds = array<i64: 1>, scalar_prefetch = 0 : i64, scratch_operands = 0 : i64, tpu.core_type = #tpu.core_type<tc>, window_params = [{transform_indices = @transform_0, window_bounds = array<i64: 16, 32>}, {pipeline_mode = #tpu.pipeline_mode<synchronous>, transform_indices = @transform_1, window_bounds = array<i64: 32, 128>}, {pipeline_mode = #tpu.pipeline_mode<synchronous>, transform_indices = @transform_2, window_bounds = array<i64: 128, 128>}, {transform_indices = @transform_3, window_bounds = array<i64: 16, 128>}]} {
    %c0 = arith.constant 0 : index
    %c0_0 = arith.constant 0 : index
    %0 = vector.load %arg1[%c0, %c0_0] : memref<16x32xf32, #tpu.memory_space<vmem>>, vector<16x32xf32>
    %1 = arith.truncf %0 : vector<16x32xf32> to vector<16x32xbf16>
    %c0_1 = arith.constant 0 : index
    %c0_2 = arith.constant 0 : index
    %2 = vector.load %arg2[%c0_1, %c0_2] : memref<32x128xbf16, #tpu.memory_space<vmem>>, vector<32x128xbf16>
    %cst = arith.constant dense<0.000000e+00> : vector<16x128xf32>
    %3 = tpu.matmul %1, %2, %cst {dimension_numbers = #tpu.dot_dimension_numbers<[1], [0], [0], [1], [0, 0, 1, 1], [], []>} : vector<16x32xbf16>, vector<32x128xbf16>, vector<16x128xf32> -> vector<16x128xf32>
    %cst_3 = arith.constant 0.000000e+00 : f32
    %4 = vector.broadcast %cst_3 : f32 to vector<16x128xf32>
    %5 = arith.maximumf %3, %4 : vector<16x128xf32>
    %6 = arith.truncf %5 : vector<16x128xf32> to vector<16x128xbf16>
    %c0_4 = arith.constant 0 : index
    %c0_5 = arith.constant 0 : index
    %7 = vector.load %arg3[%c0_4, %c0_5] : memref<128x128xbf16, #tpu.memory_space<vmem>>, vector<128x128xbf16>
    %cst_6 = arith.constant dense<0.000000e+00> : vector<16x128xf32>
    %8 = tpu.matmul %6, %7, %cst_6 {dimension_numbers = #tpu.dot_dimension_numbers<[1], [0], [0], [1], [0, 0, 1, 1], [], []>} : vector<16x128xbf16>, vector<128x128xbf16>, vector<16x128xf32> -> vector<16x128xf32>
    %c0_7 = arith.constant 0 : index
    %c0_8 = arith.constant 0 : index
    %9 = vector.load %arg4[%c0_7, %c0_8] : memref<16x128xf32, #tpu.memory_space<vmem>>, vector<16x128xf32>
    tpu.vector_store %arg4[%c0_7, %c0_8], %8 {strides = array<i32>} : memref<16x128xf32, #tpu.memory_space<vmem>>, vector<16x128xf32>,
    return
  }
  func.func @transform_0(%arg0: i32) -> (i32, i32) {
    %c0_i32 = arith.constant 0 : i32
    %c0_i32_0 = arith.constant 0 : i32
    return %arg0, %c0_i32 : i32, i32
  }
  func.func @transform_1(%arg0: i32) -> (i32, i32) {
    %c0_i32 = arith.constant 0 : i32
    %c0_i32_0 = arith.constant 0 : i32
    %c0_i32_1 = arith.constant 0 : i32
    return %c0_i32, %c0_i32_0 : i32, i32
  }
  func.func @transform_2(%arg0: i32) -> (i32, i32) {
    %c0_i32 = arith.constant 0 : i32
    %c0_i32_0 = arith.constant 0 : i32
    %c0_i32_1 = arith.constant 0 : i32
    return %c0_i32, %c0_i32_0 : i32, i32
  }
  func.func @transform_3(%arg0: i32) -> (i32, i32) {
    %c0_i32 = arith.constant 0 : i32
    %c0_i32_0 = arith.constant 0 : i32
    return %arg0, %c0_i32 : i32, i32
  }
}

module attributes {stable_mosaic.version = 11 : i64} {
  func.func @_decoder_kernel(%arg0: i32, %arg1: memref<16x32xf32, #tpu.memory_space<vmem>>, %arg2: memref<32x128xbf16, #tpu.memory_space<vmem>>, %arg3: memref<128x128xbf16, #tpu.memory_space<vmem>>, %arg4: memref<16x128xf32, #tpu.memory_space<vmem>>) attributes {dimension_semantics = [#tpu.dimension_semantics<parallel>], iteration_bounds = array<i64: 1>, scalar_prefetch = 0 : i64, scratch_operands = 0 : i64, tpu.core_type = #tpu.core_type<tc>, window_params = [{transform_indices = @transform_0, window_bounds = array<i64: 16, 32>}, {pipeline_mode = #tpu.pipeline_mode<synchronous>, transform_indices = @transform_1, window_bounds = array<i64: 32, 128>}, {pipeline_mode = #tpu.pipeline_mode<synchronous>, transform_indices = @transform_2, window_bounds = array<i64: 128, 128>}, {transform_indices = @transform_3, window_bounds = array<i64: 16, 128>}]} {
    %c0 = arith.constant 0 : index
    %c0_0 = arith.constant 0 : index
    %0 = vector.load %arg1[%c0, %c0_0] : memref<16x32xf32, #tpu.memory_space<vmem>>, vector<16x32xf32>
    %1 = arith.truncf %0 : vector<16x32xf32> to vector<16x32xbf16>
    %c0_1 = arith.constant 0 : index
    %c0_2 = arith.constant 0 : index
    %2 = vector.load %arg2[%c0_1, %c0_2] : memref<32x128xbf16, #tpu.memory_space<vmem>>, vector<32x128xbf16>
    %cst = arith.constant dense<0.000000e+00> : vector<16x128xf32>
    %3 = tpu.matmul %1, %2, %cst {dimension_numbers = #tpu.dot_dimension_numbers<[1], [0], [0], [1], [0, 0, 1, 1], [], []>} : vector<16x32xbf16>, vector<32x128xbf16>, vector<16x128xf32> -> vector<16x128xf32>
    %cst_3 = arith.constant 0.000000e+00 : f32
    %4 = vector.broadcast %cst_3 : f32 to vector<16x128xf32>
    %5 = arith.maximumf %3, %4 : vector<16x128xf32>
    %6 = arith.truncf %5 : vector<16x128xf32> to vector<16x128xbf16>
    %c0_4 = arith.constant 0 : index
    %c0_5 = arith.constant 0 : index
    %7 = vector.load %arg3[%c0_4, %c0_5] : memref<128x128xbf16, #tpu.memory_space<vmem>>, vector<128x128xbf16>
    %cst_6 = arith.constant dense<0.000000e+00> : vector<16x128xf32>
    %8 = tpu.matmul %6, %7, %cst_6 {dimension_numbers = #tpu.dot_dimension_numbers<[1], [0], [0], [1], [0, 0, 1, 1], [], []>} : vector<16x128xbf16>, vector<128x128xbf16>, vector<16x128xf32> -> vector<16x128xf32>
    %c0_7 = arith.constant 0 : index
    %c0_8 = arith.constant 0 : index
    %9 = vector.load %arg4[%c0_7, %c0_8] : memref<16x128xf32, #tpu.memory_space<vmem>>, vector<16x128xf32>
    tpu.vector_store %arg4[%c0_7, %c0_8], %8 {strides = array<i32>} : memref<16x128xf32, #tpu.memory_space<vmem>>, vector<16x128xf32>,
    return
  }
  func.func @transform_0(%arg0: i32) -> (i32, i32) {
    %c0_i32 = arith.constant 0 : i32
    %c0_i32_0 = arith.constant 0 : i32
    return %arg0, %c0_i32 : i32, i32
  }
  func.func @transform_1(%arg0: i32) -> (i32, i32) {
    %c0_i32 = arith.constant 0 : i32
    %c0_i32_0 = arith.constant 0 : i32
    %c0_i32_1 = arith.constant 0 : i32
    return %c0_i32, %c0_i32_0 : i32, i32
  }
  func.func @transform_2(%arg0: i32) -> (i32, i32) {
    %c0_i32 = arith.constant 0 : i32
    %c0_i32_0 = arith.constant 0 : i32
    %c0_i32_1 = arith.constant 0 : i32
    return %c0_i32, %c0_i32_0 : i32, i32
  }
  func.func @transform_3(%arg0: i32) -> (i32, i32) {
    %c0_i32 = arith.constant 0 : i32
    %c0_i32_0 = arith.constant 0 : i32
    return %arg0, %c0_i32 : i32, i32
  }
}

</mosaic_0001>

<bundles_post_ra>
// kernel: tpu_custom_call.1
= control target key start
LH: loop header
LB: loop body
LE: loop exit
PB: predicated region body
PF: predicated region fallthrough
CT: control target
= control target key end

     0   :  { %8 = vsyncpa [#allocation3], 0  ;;  %s410_s0 = inlined_call_operand.hbm [shape: f32[16,32], index: 0, kind: input, shape index: {}]   ;;  %s411_s1 = inlined_call_operand.hbm [shape: bf16[32,128], index: 1, kind: input, shape index: {}]   ;;  %s412_s2 = inlined_call_operand.hbm [shape: bf16[128,128], index: 2, kind: input, shape index: {}]   ;;  %s413_s3 = inlined_call_operand.hbm [shape: f32[16,128], index: 3, kind: output, shape index: {}]  }
   0x1   :  { %9 = vsyncpa [#allocation6], 0  ;;  %s28_s14 = sshll.u32 %s411_s1, 4  ;;  %s29_s14 = int_to_ptr.hbm [resolvable:$true] %s28_s14 }
   0x2   :  { %10 = vsyncpa [#allocation4], 0  ;;  %s364_s15 = smov [#allocation5]   ;;  %s15_s19 = sshll.u32 %s410_s0, 4  ;;  %s16_s19 = int_to_ptr.hbm [resolvable:$true] %s15_s19 }
   0x3   :  { %s30_s16 = sshll.u32 %s364_s15, 4  ;;  %s365_s20 = smov 64   ;;  %s31_s16 = int_to_ptr.vmem [resolvable:$true] %s30_s16 }
   0x4   :  { %s366_s21 = smov 4   ;;  %s367_s22 = smov [#allocation2]  }
   0x5   :  { %36 = dma.hbm_to_vmem [thread:$0]  %s29_s14, 256, %s31_s16, [#allocation6], %s365_s20, %s365_s20, %s366_s21  }
   0x6   :  { %s17_s23 = sshll.u32 %s367_s22, 4  ;;  %s368_s24 = smov 128   ;;  %s18_s23 = int_to_ptr.vmem [resolvable:$true] %s17_s23 }
   0x7   :  { %s369_s25 = smov 8   ;;  %s41_s27 = sshll.u32 %s412_s2, 4  ;;  %s42_s27 = int_to_ptr.hbm [resolvable:$true] %s41_s27 }
   0x8   :  { %23 = dma.hbm_to_vmem [thread:$0]  %s16_s19, 256, %s18_s23, [#allocation3], %s368_s24, %s368_s24, %s369_s25  }
   0x9   :  { %s370_s28 = smov [#allocation7]  }
   0xa   :  { %s43_s0 = sshll.u32 %s370_s28, 4  ;;  %s44_s0 = int_to_ptr.vmem [resolvable:$true] %s43_s0 }
   0xb   :  { %49 = dma.hbm_to_vmem [thread:$0]  %s42_s27, 1024, %s44_s0, [#allocation6], %s365_s20, %s365_s20, %s366_s21  }
   0xc   :  { %358 = dma.done.wait [#allocation3], 256  }
   0xd   :  { %359 = vsyncadd [#allocation3], 4294967040 }
   0xe   :  { %360 = dma.done.wait [#allocation6], 1280  }
   0xf   :  { %361 = vsyncadd [#allocation6], 4294966016  ;;  %v245_v0 = vld [vmem:[#allocation5 + $0x8] sm:$0xff]  ;;  %v244_v2 = vld [vmem:[#allocation5] sm:$0xff]  ;;  %vm82_vm0 = vcmask 261120   ;;  %s371_s2 = smov [#allocation8]  }
  0x10   :  { %v253_v1 = vld [vmem:[#allocation7 + $0x38] sm:$0xff]  ;;  %92 = vmatpush.bf16.msra.mxu0 %v245_v0  ;;  %v63_v3 = vld [vmem:[#allocation2] sm:$0xff]  ;;  %v64_v4 = vld [vmem:[#allocation2 + $0x8] sm:$0xff]  ;;  %s187_s29 = sshll.u32 %s371_s2, 4  ;;  %s189_s5 = sshll.u32 %s413_s3, 4  ;;  %s188_s29 = int_to_ptr.vmem [resolvable:$true] %s187_s29  ;;  %s190_s5 = int_to_ptr.hbm [resolvable:$true] %s189_s5 }
  0x11   :  { %167 = vmatpush.bf16.msra.mxu1 %v253_v1  ;;  %v252_v5 = vld [vmem:[#allocation7 + $0x30] sm:$0xff]  ;;  %v65_v6 = vpack.c.bf16 %v64_v4, %v63_v3  ;;  %v251_v7 = vld [vmem:[#allocation7 + $0x28] sm:$0xff]  ;;  %v250_v8 = vld [vmem:[#allocation7 + $0x20] sm:$0xff] }
  0x12   :  { %v249_v9 = vld [vmem:[#allocation7 + $0x18] sm:$0xff]  ;;  %v248_v10 = vld [vmem:[#allocation7 + $0x10] sm:$0xff]  ;;  %v247_v11 = vld [vmem:[#allocation7 + $0x8] sm:$0xff] }
  0x13   :  { %v246_v12 = vld [vmem:[#allocation7] sm:$0xff] }
  0x14   :  { %93 = vmatpush.bf16.msra.mxu0 %v244_v2 }
  0x15   :  { %168 = vmatpush.bf16.msra.mxu1 %v252_v5 }
  0x17   :  { %211 = vmatmul.msk.bf16.vlgmr.msra.gmra.mxu0 %vm82_vm0, %v65_v6 }
  0x19   :  { %169 = vmatpush.bf16.msra.mxu1 %v251_v7 }
  0x1d   :  { %170 = vmatpush.bf16.msra.mxu1 %v250_v8 }
  0x21   :  { %171 = vmatpush.bf16.msra.mxu1 %v249_v9 }
  0x25   :  { %172 = vmatpush.bf16.msra.mxu1 %v248_v10 }
  0x29   :  { %173 = vmatpush.bf16.msra.mxu1 %v247_v11 }
  0x2d   :  { %174 = vmatpush.bf16.msra.mxu1 %v246_v12 }
  0x94   :  { %v95_v13 = vpop.f32.mrf.mxu0 }
  0x95   :  { %v100_v15 = vmax.f32 %v95_v13, 0.0 }
  0x9c   :  { %v97_v14 = vpop.f32.mrf.mxu0 }
  0x9d   :  { %v101_v16 = vmax.f32 %v97_v14, 0.0 }
  0x9f   :  { %v102_v17 = vpack.c.bf16 %v101_v16, %v100_v15 }
  0xa1   :  { %175 = vmatmul.bf16.vlgmr.msra.gmra.mxu1 %v102_v17 }
 0x11e   :  { %v176_v18 = vpop.f32.mrf.mxu1 }
 0x11f   :  { %181 = vst [vmem:[#allocation8] sm:$0xff] %v176_v18 }
 0x126   :  { %v178_v19 = vpop.f32.mrf.mxu1 }
 0x127   :  { %182 = vst [vmem:[#allocation8 + $0x8] sm:$0xff] %v178_v19 }
 0x128   :  { %195 = dma.vmem_to_hbm [thread:$0]  %s188_s29, 256, %s190_s5, [#allocation4], %s368_s24, %s368_s24, %s369_s25  }
 0x129   :  { %362 = dma.done.wait [#allocation4], 256  }
 0x12a   :  { %363 = vsyncadd [#allocation4], 4294967040 }
 0x12b   :  { %200 = vsyncpa [#allocation3], 1 }
 0x12c   :  { %201 = vsyncpa [#allocation6], 1 }
 0x12d   :  { %202 = vsyncpa [#allocation4], 1 }

// kernel: tpu_custom_call.1
= control target key start
LH: loop header
LB: loop body
LE: loop exit
PB: predicated region body
PF: predicated region fallthrough
CT: control target
= control target key end

     0   :  { %8 = vsyncpa [#allocation3], 0  ;;  %s410_s0 = inlined_call_operand.hbm [shape: f32[16,32], index: 0, kind: input, shape index: {}]   ;;  %s411_s1 = inlined_call_operand.hbm [shape: bf16[32,128], index: 1, kind: input, shape index: {}]   ;;  %s412_s2 = inlined_call_operand.hbm [shape: bf16[128,128], index: 2, kind: input, shape index: {}]   ;;  %s413_s3 = inlined_call_operand.hbm [shape: f32[16,128], index: 3, kind: output, shape index: {}]  }
   0x1   :  { %9 = vsyncpa [#allocation6], 0  ;;  %s28_s14 = sshll.u32 %s411_s1, 4  ;;  %s29_s14 = int_to_ptr.hbm [resolvable:$true] %s28_s14 }
   0x2   :  { %10 = vsyncpa [#allocation4], 0  ;;  %s364_s15 = smov [#allocation5]   ;;  %s15_s19 = sshll.u32 %s410_s0, 4  ;;  %s16_s19 = int_to_ptr.hbm [resolvable:$true] %s15_s19 }
   0x3   :  { %s30_s16 = sshll.u32 %s364_s15, 4  ;;  %s365_s20 = smov 64   ;;  %s31_s16 = int_to_ptr.vmem [resolvable:$true] %s30_s16 }
   0x4   :  { %s366_s21 = smov 4   ;;  %s367_s22 = smov [#allocation2]  }
   0x5   :  { %36 = dma.hbm_to_vmem [thread:$0]  %s29_s14, 256, %s31_s16, [#allocation6], %s365_s20, %s365_s20, %s366_s21  }
   0x6   :  { %s17_s23 = sshll.u32 %s367_s22, 4  ;;  %s368_s24 = smov 128   ;;  %s18_s23 = int_to_ptr.vmem [resolvable:$true] %s17_s23 }
   0x7   :  { %s369_s25 = smov 8   ;;  %s41_s27 = sshll.u32 %s412_s2, 4  ;;  %s42_s27 = int_to_ptr.hbm [resolvable:$true] %s41_s27 }
   0x8   :  { %23 = dma.hbm_to_vmem [thread:$0]  %s16_s19, 256, %s18_s23, [#allocation3], %s368_s24, %s368_s24, %s369_s25  }
   0x9   :  { %s370_s28 = smov [#allocation7]  }
   0xa   :  { %s43_s0 = sshll.u32 %s370_s28, 4  ;;  %s44_s0 = int_to_ptr.vmem [resolvable:$true] %s43_s0 }
   0xb   :  { %49 = dma.hbm_to_vmem [thread:$0]  %s42_s27, 1024, %s44_s0, [#allocation6], %s365_s20, %s365_s20, %s366_s21  }
   0xc   :  { %358 = dma.done.wait [#allocation3], 256  }
   0xd   :  { %359 = vsyncadd [#allocation3], 4294967040 }
   0xe   :  { %360 = dma.done.wait [#allocation6], 1280  }
   0xf   :  { %361 = vsyncadd [#allocation6], 4294966016  ;;  %v245_v0 = vld [vmem:[#allocation5 + $0x8] sm:$0xff]  ;;  %v244_v2 = vld [vmem:[#allocation5] sm:$0xff]  ;;  %vm82_vm0 = vcmask 261120   ;;  %s371_s2 = smov [#allocation8]  }
  0x10   :  { %v253_v1 = vld [vmem:[#allocation7 + $0x38] sm:$0xff]  ;;  %92 = vmatpush.bf16.msra.mxu0 %v245_v0  ;;  %v63_v3 = vld [vmem:[#allocation2] sm:$0xff]  ;;  %v64_v4 = vld [vmem:[#allocation2 + $0x8] sm:$0xff]  ;;  %s187_s29 = sshll.u32 %s371_s2, 4  ;;  %s189_s5 = sshll.u32 %s413_s3, 4  ;;  %s188_s29 = int_to_ptr.vmem [resolvable:$true] %s187_s29  ;;  %s190_s5 = int_to_ptr.hbm [resolvable:$true] %s189_s5 }
  0x11   :  { %167 = vmatpush.bf16.msra.mxu1 %v253_v1  ;;  %v252_v5 = vld [vmem:[#allocation7 + $0x30] sm:$0xff]  ;;  %v65_v6 = vpack.c.bf16 %v64_v4, %v63_v3  ;;  %v251_v7 = vld [vmem:[#allocation7 + $0x28] sm:$0xff]  ;;  %v250_v8 = vld [vmem:[#allocation7 + $0x20] sm:$0xff] }
  0x12   :  { %v249_v9 = vld [vmem:[#allocation7 + $0x18] sm:$0xff]  ;;  %v248_v10 = vld [vmem:[#allocation7 + $0x10] sm:$0xff]  ;;  %v247_v11 = vld [vmem:[#allocation7 + $0x8] sm:$0xff] }
  0x13   :  { %v246_v12 = vld [vmem:[#allocation7] sm:$0xff] }
  0x14   :  { %93 = vmatpush.bf16.msra.mxu0 %v244_v2 }
  0x15   :  { %168 = vmatpush.bf16.msra.mxu1 %v252_v5 }
  0x17   :  { %211 = vmatmul.msk.bf16.vlgmr.msra.gmra.mxu0 %vm82_vm0, %v65_v6 }
  0x19   :  { %169 = vmatpush.bf16.msra.mxu1 %v251_v7 }
  0x1d   :  { %170 = vmatpush.bf16.msra.mxu1 %v250_v8 }
  0x21   :  { %171 = vmatpush.bf16.msra.mxu1 %v249_v9 }
  0x25   :  { %172 = vmatpush.bf16.msra.mxu1 %v248_v10 }
  0x29   :  { %173 = vmatpush.bf16.msra.mxu1 %v247_v11 }
  0x2d   :  { %174 = vmatpush.bf16.msra.mxu1 %v246_v12 }
  0x94   :  { %v95_v13 = vpop.f32.mrf.mxu0 }
  0x95   :  { %v100_v15 = vmax.f32 %v95_v13, 0.0 }
  0x9c   :  { %v97_v14 = vpop.f32.mrf.mxu0 }
  0x9d   :  { %v101_v16 = vmax.f32 %v97_v14, 0.0 }
  0x9f   :  { %v102_v17 = vpack.c.bf16 %v101_v16, %v100_v15 }
  0xa1   :  { %175 = vmatmul.bf16.vlgmr.msra.gmra.mxu1 %v102_v17 }
 0x11e   :  { %v176_v18 = vpop.f32.mrf.mxu1 }
 0x11f   :  { %181 = vst [vmem:[#allocation8] sm:$0xff] %v176_v18 }
 0x126   :  { %v178_v19 = vpop.f32.mrf.mxu1 }
 0x127   :  { %182 = vst [vmem:[#allocation8 + $0x8] sm:$0xff] %v178_v19 }
 0x128   :  { %195 = dma.vmem_to_hbm [thread:$0]  %s188_s29, 256, %s190_s5, [#allocation4], %s368_s24, %s368_s24, %s369_s25  }
 0x129   :  { %362 = dma.done.wait [#allocation4], 256  }
 0x12a   :  { %363 = vsyncadd [#allocation4], 4294967040 }
 0x12b   :  { %200 = vsyncpa [#allocation3], 1 }
 0x12c   :  { %201 = vsyncpa [#allocation6], 1 }
 0x12d   :  { %202 = vsyncpa [#allocation4], 1 }

</bundles_post_ra>
